<compile_context>
chip_gen: v6e
topology: v6e:2x2x1
jax: 0.10.0
libtpu: 0.0.40
codegen_flags: <defaults>
</compile_context>

<pallas_src>
import jax
import jax.numpy as jnp
from jax import lax
from jax.experimental import pallas as pl
from jax.experimental.pallas import tpu as pltpu


def _cross_view_kernel(top_ref, side_ref, a_ref, c_ref, wv_ref, bv_ref,
                       out_ref, v_ref):
    """One (batch, head, query-tile) step of the CrossViewTransformer forward.

    top_ref  : (1, C, Tq)  query-image tile, channels-first, f32
    side_ref : (1, C, N)   key/value image (full KV), channels-first, bf16
    a_ref    : (1, C, C)   folded Wk^T @ Wq, bf16
    c_ref    : (1, C, 1)   folded Wk^T @ bq, f32
    wv_ref   : (1, C, C)   value 1x1-conv weight (out, in), bf16
    bv_ref   : (1, C, 1)   value bias, f32
    out_ref  : (1, 1, C, Tq) f32  output = top + attention(top, side)
    v_ref    : (C, N) bf16 VMEM scratch caching the value projection
    """
    qi = pl.program_id(2)
    top = top_ref[0]                                   # (C, Tq) f32
    side = side_ref[0]                                 # (C, N)  bf16

    # Value projection (1x1 conv) computed once per (batch, head), reused
    # across every query tile of this head.
    @pl.when(qi == 0)
    def _():
        v_ref[...] = (jnp.dot(wv_ref[0], side, preferred_element_type=jnp.float32)
                      + bv_ref[0]).astype(jnp.bfloat16)

    # Folded query/key projections: energy'(kv, q) = side^T (A @ top + c).
    # (The dropped key-bias term is constant per query column -> no effect
    # on the softmax over kv.)
    top_bf = top.astype(jnp.bfloat16)
    qeff = (jnp.dot(a_ref[0], top_bf, preferred_element_type=jnp.float32)
            + c_ref[0]).astype(jnp.bfloat16)           # (C, Tq)
    energy = lax.dot_general(
        side, qeff, (((0,), (0,)), ((), ())),
        preferred_element_type=jnp.float32)            # (N_kv, Tq)

    # Softmax over the KV axis (axis 0); stats are (1, Tq) and broadcast
    # naturally into both the scores and the (C, Tq) result.
    m = jnp.max(energy, axis=0, keepdims=True)          # (1, Tq)
    p = jnp.exp(energy - m)                              # (N, Tq) f32
    denom = jnp.sum(p, axis=0, keepdims=True)            # (1, Tq)

    # Unnormalized attention @ V on the MXU (deep contraction over N_kv),
    # then scale columns by 1/denom (EUP reciprocal; C*Tq multiplies).
    trans = jnp.dot(v_ref[...], p.astype(jnp.bfloat16),
                    preferred_element_type=jnp.float32)  # (C, Tq)
    inv = pl.reciprocal(denom, approx=True)               # (1, Tq)

    out_ref[0, 0] = top + trans * inv


def _pick_q_tile(n):
    """Query-tile size: full N for small maps, else a 128-multiple divisor."""
    if n <= 256:
        return n
    target = 256 if n <= 4096 else 128
    for t in range(target, 0, -128):
        if n % t == 0:
            return t
    return n  # ragged N: fall back to untiled (typical W*H sizes divide 128)


def multi_head_transformer(query_nchw, keyval_nchw, params):
    """params: dict with wq,bq,wk,bk,wv,bv stacked over heads (conv layout)."""
    B, C, W, Hsp = query_nchw.shape
    N = W * Hsp
    num_head = params["wq"].shape[0]

    # NCHW -> (B, C, N): a pure reshape (same memory order as torch .view).
    top = query_nchw.reshape(B, C, N).astype(jnp.float32)
    side = keyval_nchw.reshape(B, C, N).astype(jnp.bfloat16)

    # Fold the query/key 1x1 convs into a single (C, C) matrix per head.
    wq = params["wq"].astype(jnp.float32)   # (H, Cq, C)
    wk = params["wk"].astype(jnp.float32)   # (H, Cq, C)
    bq = params["bq"].astype(jnp.float32)   # (H, Cq, 1)
    a_mat = jnp.einsum("hoc,hod->hcd", wk, wq).astype(jnp.bfloat16)  # (H, C, C)
    c_vec = jnp.einsum("hoc,hoz->hcz", wk, bq).astype(jnp.float32)   # (H, C, 1)
    # params["bk"] cancels inside the softmax over the KV axis -> unused.
    wv = params["wv"].astype(jnp.bfloat16)
    bv = params["bv"].astype(jnp.float32)

    Tq = _pick_q_tile(N)
    n_qt = N // Tq

    out = pl.pallas_call(
        _cross_view_kernel,
        out_shape=jax.ShapeDtypeStruct((B, num_head, C, N), jnp.float32),
        grid_spec=pltpu.PrefetchScalarGridSpec(
            num_scalar_prefetch=0,
            # q_tile innermost so the per-head V cache (VMEM scratch) is
            # computed once per (batch, head); side keeps a constant block
            # index and is DMA'd once per batch.
            grid=(B, num_head, n_qt),
            in_specs=[
                pl.BlockSpec((1, C, Tq), lambda b, h, qi: (b, 0, qi)),  # top tile
                pl.BlockSpec((1, C, N), lambda b, h, qi: (b, 0, 0)),    # side (full KV)
                pl.BlockSpec((1, C, C), lambda b, h, qi: (h, 0, 0)),    # A = Wk^T Wq
                pl.BlockSpec((1, C, 1), lambda b, h, qi: (h, 0, 0)),    # c = Wk^T bq
                pl.BlockSpec((1, C, C), lambda b, h, qi: (h, 0, 0)),    # Wv
                pl.BlockSpec((1, C, 1), lambda b, h, qi: (h, 0, 0)),    # bv
            ],
            out_specs=pl.BlockSpec((1, 1, C, Tq), lambda b, h, qi: (b, h, 0, qi)),
            scratch_shapes=[pltpu.VMEM((C, N), jnp.bfloat16)],
        ),
        compiler_params=pltpu.CompilerParams(
            dimension_semantics=("parallel", "parallel", "arbitrary")),
    )(top, side, a_mat, c_vec, wv, bv)

    # (B, H, C, N) -> (B, H*C, W, Hsp): identical to torch.cat over heads.
    return out.reshape(B, num_head * C, W, Hsp)


def _reference(query_nchw, keyval_nchw, params):
    """Pure-JAX f32 reference mirroring the PyTorch forward pass exactly."""
    B, C, W, Hsp = query_nchw.shape
    N = W * Hsp
    num_head = params["wq"].shape[0]
    top = query_nchw.reshape(B, C, N)
    side = keyval_nchw.reshape(B, C, N)
    outs = []
    for h in range(num_head):
        q = jnp.einsum("oc,bcn->bon", params["wq"][h], top) + params["bq"][h]   # (B,Cq,N)
        k = jnp.einsum("oc,bcn->bon", params["wk"][h], side) + params["bk"][h]  # (B,Cq,N)
        v = jnp.einsum("oc,bcn->bon", params["wv"][h], side) + params["bv"][h]  # (B,C,N)
        energy = jnp.einsum("bcq,bck->bqk", q, k)          # (B, Nq, Nk)
        attn = jax.nn.softmax(energy, axis=-1)
        trans = jnp.einsum("bqk,bck->bcq", attn, v)        # (B, C, Nq)
        outs.append((top + trans).reshape(B, C, W, Hsp))
    return jnp.concatenate(outs, axis=1)


def _make_params(key, num_head, C):
    """Deterministic synthetic parameters (1x1-conv weights, (out,in) layout)."""
    Cq = C // 8
    ks = jax.random.split(key, 6)
    scale = 1.0 / jnp.sqrt(C)
    return {
        "wq": jax.random.uniform(ks[0], (num_head, Cq, C), jnp.float32, -scale, scale),
        "bq": jax.random.uniform(ks[1], (num_head, Cq, 1), jnp.float32, -scale, scale),
        "wk": jax.random.uniform(ks[2], (num_head, Cq, C), jnp.float32, -scale, scale),
        "bk": jax.random.uniform(ks[3], (num_head, Cq, 1), jnp.float32, -scale, scale),
        "wv": jax.random.uniform(ks[4], (num_head, C, C), jnp.float32, -scale, scale),
        "bv": jax.random.uniform(ks[5], (num_head, C, 1), jnp.float32, -scale, scale),
    }


def _run_case(case_key, B, C, W, Hsp, num_head):
    k_q, k_kv, k_p = jax.random.split(case_key, 3)
    query = jax.random.normal(k_q, (B, C, W, Hsp), jnp.float32)
    keyval = jax.random.normal(k_kv, (B, C, W, Hsp), jnp.float32)
    params = _make_params(k_p, num_head, C)

    out = multi_head_transformer(query, keyval, params)
    out = jax.block_until_ready(out)

    ref = _reference(query, keyval, params)
    assert out.shape == (B, num_head * C, W, Hsp), out.shape
    err = float(jnp.max(jnp.abs(out - ref)))
    # bf16 MXU operands -> looser-than-f32 tolerance (softmax/accum in f32).
    assert jnp.allclose(out, ref, atol=5e-2, rtol=5e-2), err


if __name__ == "__main__":
    root = jax.random.PRNGKey(0)
    k0, k1 = jax.random.split(root, 2)
    # Small case: N = 64 (single query tile).
    _run_case(k0, B=2, C=16, W=8, Hsp=8, num_head=2)
    # Larger spatial map: N = 512 exercises the query-tiling path (Tq = 256,
    # 2 query tiles) and the cached value projection across query tiles.
    _run_case(k1, B=2, C=16, W=16, Hsp=32, num_head=2)
    print("KERNEL_OK")
</pallas_src>

<mosaic_0001>
module attributes {stable_mosaic.version = 11 : i64} {
  func.func @_cross_view_kernel(%arg0: i32, %arg1: i32, %arg2: i32, %arg3: memref<1x16x64xf32, #tpu.memory_space<vmem>>, %arg4: memref<1x16x64xbf16, #tpu.memory_space<vmem>>, %arg5: memref<1x16x16xbf16, #tpu.memory_space<vmem>>, %arg6: memref<1x16x1xf32, #tpu.memory_space<vmem>>, %arg7: memref<1x16x16xbf16, #tpu.memory_space<vmem>>, %arg8: memref<1x16x1xf32, #tpu.memory_space<vmem>>, %arg9: memref<1x1x16x64xf32, #tpu.memory_space<vmem>>, %arg10: memref<16x64xbf16, #tpu.memory_space<vmem>>) attributes {dimension_semantics = [#tpu.dimension_semantics<parallel>, #tpu.dimension_semantics<parallel>, #tpu.dimension_semantics<arbitrary>], iteration_bounds = array<i64: 2, 2, 1>, scalar_prefetch = 0 : i64, scratch_operands = 1 : i64, tpu.core_type = #tpu.core_type<tc>, window_params = [{transform_indices = @transform_0, window_bounds = array<i64: 1, 16, 64>}, {transform_indices = @transform_1, window_bounds = array<i64: 1, 16, 64>}, {transform_indices = @transform_2, window_bounds = array<i64: 1, 16, 16>}, {transform_indices = @transform_3, window_bounds = array<i64: 1, 16, 1>}, {transform_indices = @transform_4, window_bounds = array<i64: 1, 16, 16>}, {transform_indices = @transform_5, window_bounds = array<i64: 1, 16, 1>}, {transform_indices = @transform_6, window_bounds = array<i64: 1, 1, 16, 64>}]} {
    %c0 = arith.constant 0 : index
    %c0_0 = arith.constant 0 : index
    %c0_1 = arith.constant 0 : index
    %0 = vector.load %arg3[%c0, %c0_0, %c0_1] : memref<1x16x64xf32, #tpu.memory_space<vmem>>, vector<1x16x64xf32>
    %1 = vector.shape_cast %0 : vector<1x16x64xf32> to vector<16x64xf32>
    %c0_2 = arith.constant 0 : index
    %c0_3 = arith.constant 0 : index
    %c0_4 = arith.constant 0 : index
    %2 = vector.load %arg4[%c0_2, %c0_3, %c0_4] : memref<1x16x64xbf16, #tpu.memory_space<vmem>>, vector<1x16x64xbf16>
    %3 = vector.shape_cast %2 : vector<1x16x64xbf16> to vector<16x64xbf16>
    %c0_i32 = arith.constant 0 : i32
    %4 = arith.cmpi eq, %arg2, %c0_i32 : i32
    %5 = arith.extui %4 : i1 to i32
    %c0_i32_5 = arith.constant 0 : i32
    %6 = arith.cmpi ne, %5, %c0_i32_5 : i32
    scf.if %6 {
      %c0_22 = arith.constant 0 : index
      %c0_23 = arith.constant 0 : index
      %c0_24 = arith.constant 0 : index
      %34 = vector.load %arg7[%c0_22, %c0_23, %c0_24] : memref<1x16x16xbf16, #tpu.memory_space<vmem>>, vector<1x16x16xbf16>
      %35 = vector.shape_cast %34 : vector<1x16x16xbf16> to vector<16x16xbf16>
      %cst_25 = arith.constant dense<0.000000e+00> : vector<16x64xf32>
      %36 = tpu.matmul %35, %3, %cst_25 {dimension_numbers = #tpu.dot_dimension_numbers<[1], [0], [0], [1], [0, 0, 1, 1], [], []>} : vector<16x16xbf16>, vector<16x64xbf16>, vector<16x64xf32> -> vector<16x64xf32>
      %c0_26 = arith.constant 0 : index
      %c0_27 = arith.constant 0 : index
      %c0_28 = arith.constant 0 : index
      %37 = vector.load %arg8[%c0_26, %c0_27, %c0_28] : memref<1x16x1xf32, #tpu.memory_space<vmem>>, vector<1x16x1xf32>
      %38 = vector.shape_cast %37 : vector<1x16x1xf32> to vector<16x1xf32>
      %39 = vector.broadcast %38 : vector<16x1xf32> to vector<16x64xf32>
      %40 = arith.addf %36, %39 : vector<16x64xf32>
      %41 = arith.truncf %40 : vector<16x64xf32> to vector<16x64xbf16>
      %c0_29 = arith.constant 0 : index
      %c0_30 = arith.constant 0 : index
      %42 = vector.load %arg10[%c0_29, %c0_30] : memref<16x64xbf16, #tpu.memory_space<vmem>>, vector<16x64xbf16>
      tpu.vector_store %arg10[%c0_29, %c0_30], %41 {strides = array<i32>} : memref<16x64xbf16, #tpu.memory_space<vmem>>, vector<16x64xbf16>,
    } else {
    }
    %7 = arith.truncf %1 : vector<16x64xf32> to vector<16x64xbf16>
    %c0_6 = arith.constant 0 : index
    %c0_7 = arith.constant 0 : index
    %c0_8 = arith.constant 0 : index
    %8 = vector.load %arg5[%c0_6, %c0_7, %c0_8] : memref<1x16x16xbf16, #tpu.memory_space<vmem>>, vector<1x16x16xbf16>
    %9 = vector.shape_cast %8 : vector<1x16x16xbf16> to vector<16x16xbf16>
    %cst = arith.constant dense<0.000000e+00> : vector<16x64xf32>
    %10 = tpu.matmul %9, %7, %cst {dimension_numbers = #tpu.dot_dimension_numbers<[1], [0], [0], [1], [0, 0, 1, 1], [], []>} : vector<16x16xbf16>, vector<16x64xbf16>, vector<16x64xf32> -> vector<16x64xf32>
    %c0_9 = arith.constant 0 : index
    %c0_10 = arith.constant 0 : index
    %c0_11 = arith.constant 0 : index
    %11 = vector.load %arg6[%c0_9, %c0_10, %c0_11] : memref<1x16x1xf32, #tpu.memory_space<vmem>>, vector<1x16x1xf32>
    %12 = vector.shape_cast %11 : vector<1x16x1xf32> to vector<16x1xf32>
    %13 = vector.broadcast %12 : vector<16x1xf32> to vector<16x64xf32>
    %14 = arith.addf %10, %13 : vector<16x64xf32>
    %15 = arith.truncf %14 : vector<16x64xf32> to vector<16x64xbf16>
    %cst_12 = arith.constant dense<0.000000e+00> : vector<64x64xf32>
    %16 = tpu.matmul %3, %15, %cst_12 {dimension_numbers = #tpu.dot_dimension_numbers<[0], [0], [1], [1], [0, 1, 1, 1], [], []>} : vector<16x64xbf16>, vector<16x64xbf16>, vector<64x64xf32> -> vector<64x64xf32>
    %cst_13 = arith.constant dense<0xFF800000> : vector<64xf32>
    %17 = vector.multi_reduction <maximumf>, %16, %cst_13 [0] : vector<64x64xf32> to vector<64xf32>
    %18 = vector.shape_cast %17 : vector<64xf32> to vector<1x64xf32>
    %19 = vector.broadcast %18 : vector<1x64xf32> to vector<64x64xf32>
    %20 = arith.subf %16, %19 : vector<64x64xf32>
    %21 = math.exp %20 : vector<64x64xf32>
    %cst_14 = arith.constant dense<0.000000e+00> : vector<64xf32>
    %22 = vector.multi_reduction <add>, %21, %cst_14 [0] : vector<64x64xf32> to vector<64xf32>
    %23 = vector.shape_cast %22 : vector<64xf32> to vector<1x64xf32>
    %c0_15 = arith.constant 0 : index
    %c0_16 = arith.constant 0 : index
    %24 = vector.load %arg10[%c0_15, %c0_16] : memref<16x64xbf16, #tpu.memory_space<vmem>>, vector<16x64xbf16>
    %25 = arith.truncf %21 : vector<64x64xf32> to vector<64x64xbf16>
    %cst_17 = arith.constant dense<0.000000e+00> : vector<16x64xf32>
    %26 = tpu.matmul %24, %25, %cst_17 {dimension_numbers = #tpu.dot_dimension_numbers<[1], [0], [0], [1], [0, 0, 1, 1], [], []>} : vector<16x64xbf16>, vector<64x64xbf16>, vector<16x64xf32> -> vector<16x64xf32>
    %27 = tpu.reciprocal %23 {approx = true} : vector<1x64xf32> -> vector<1x64xf32>
    %28 = vector.broadcast %27 : vector<1x64xf32> to vector<16x64xf32>
    %29 = arith.mulf %26, %28 : vector<16x64xf32>
    %30 = arith.addf %1, %29 : vector<16x64xf32>
    %c0_18 = arith.constant 0 : index
    %c0_19 = arith.constant 0 : index
    %c0_20 = arith.constant 0 : index
    %c0_21 = arith.constant 0 : index
    %31 = vector.load %arg9[%c0_18, %c0_19, %c0_20, %c0_21] : memref<1x1x16x64xf32, #tpu.memory_space<vmem>>, vector<1x1x16x64xf32>
    %32 = vector.shape_cast %31 : vector<1x1x16x64xf32> to vector<16x64xf32>
    %33 = vector.shape_cast %30 : vector<16x64xf32> to vector<1x1x16x64xf32>
    tpu.vector_store %arg9[%c0_18, %c0_19, %c0_20, %c0_21], %33 {strides = array<i32>} : memref<1x1x16x64xf32, #tpu.memory_space<vmem>>, vector<1x1x16x64xf32>,
    return
  }
  func.func @transform_0(%arg0: i32, %arg1: i32, %arg2: i32) -> (i32, i32, i32) {
    %c0_i32 = arith.constant 0 : i32
    %c0_i32_0 = arith.constant 0 : i32
    return %arg0, %c0_i32, %arg2 : i32, i32, i32
  }
  func.func @transform_1(%arg0: i32, %arg1: i32, %arg2: i32) -> (i32, i32, i32) {
    %c0_i32 = arith.constant 0 : i32
    %c0_i32_0 = arith.constant 0 : i32
    %c0_i32_1 = arith.constant 0 : i32
    return %arg0, %c0_i32, %c0_i32_0 : i32, i32, i32
  }
  func.func @transform_2(%arg0: i32, %arg1: i32, %arg2: i32) -> (i32, i32, i32) {
    %c0_i32 = arith.constant 0 : i32
    %c0_i32_0 = arith.constant 0 : i32
    %c0_i32_1 = arith.constant 0 : i32
    return %arg1, %c0_i32, %c0_i32_0 : i32, i32, i32
  }
  func.func @transform_3(%arg0: i32, %arg1: i32, %arg2: i32) -> (i32, i32, i32) {
    %c0_i32 = arith.constant 0 : i32
    %c0_i32_0 = arith.constant 0 : i32
    %c0_i32_1 = arith.constant 0 : i32
    return %arg1, %c0_i32, %c0_i32_0 : i32, i32, i32
  }
  func.func @transform_4(%arg0: i32, %arg1: i32, %arg2: i32) -> (i32, i32, i32) {
    %c0_i32 = arith.constant 0 : i32
    %c0_i32_0 = arith.constant 0 : i32
    %c0_i32_1 = arith.constant 0 : i32
    return %arg1, %c0_i32, %c0_i32_0 : i32, i32, i32
  }
  func.func @transform_5(%arg0: i32, %arg1: i32, %arg2: i32) -> (i32, i32, i32) {
    %c0_i32 = arith.constant 0 : i32
    %c0_i32_0 = arith.constant 0 : i32
    %c0_i32_1 = arith.constant 0 : i32
    return %arg1, %c0_i32, %c0_i32_0 : i32, i32, i32
  }
  func.func @transform_6(%arg0: i32, %arg1: i32, %arg2: i32) -> (i32, i32, i32, i32) {
    %c0_i32 = arith.constant 0 : i32
    %c0_i32_0 = arith.constant 0 : i32
    return %arg0, %arg1, %c0_i32, %arg2 : i32, i32, i32, i32
  }
}

</mosaic_0001>

<bundles_post_ra>
// kernel: tpu_custom_call.1
= control target key start
LH: loop header
LB: loop body
LE: loop exit
PB: predicated region body
PF: predicated region fallthrough
CT: control target
= control target key end

     0   :  { %s1645_s0 = inlined_call_operand.vmem [shape: f32[2,16,64], index: 0, kind: input, shape index: {}]   ;;  %s1646_s1 = inlined_call_operand.vmem [shape: bf16[2,16,64], index: 1, kind: input, shape index: {}]   ;;  %s1647_s2 = inlined_call_operand.vmem [shape: bf16[2,16,16], index: 2, kind: input, shape index: {}]   ;;  %s1648_s3 = inlined_call_operand.vmem [shape: f32[2,16,1], index: 3, kind: input, shape index: {}]   ;;  %s1649_s4 = inlined_call_operand.hbm [shape: bf16[2,16,16], index: 4, kind: input, shape index: {}]   ;;  %s1650_s5 = inlined_call_operand.vmem [shape: f32[2,16,1], index: 5, kind: input, shape index: {}]   ;;  %s1651_s6 = inlined_call_operand.hbm [shape: f32[2,2,16,64], index: 6, kind: output, shape index: {}]  }
   0x1   :  { %1660 = sst [smem:[#allocation19_spill]] %s1649_s4 }
   0x2   :  { %11 = vsyncpa [#allocation4], 0 }
   0x3   :  { %13 = vsyncpa [#allocation4 + $0x1], 0 }
   0x4   :  { %14 = vsyncpa [#allocation5], 0 }
   0x5   :  { %16 = vsyncpa [#allocation5 + $0x1], 0  ;;  %s1385_s21 = smov 0   ;;  %s1387_s22 = smov 0  }
   0x6   :  { %s1389_s23 = smov 0   ;;  %s1391_s24 = smov 0  }
   0x7   :  { %s1393_s25 = smov 0   ;;  %s1395_s26 = smov 0  }
   0x8   :  { %s1397_s27 = smov 0   ;;  %s1399_s28 = smov 0  }
   0x9   :  { %s1401_s29 = smov 0   ;;  %s1403_s30 = smov 0  }
   0xa   :  { %s1405_s7 = smov 0  }
   0xb LB: > { %1661 = sst [smem:[#allocation9_spill]] %s1307_s23  ;;  %s962_s8 = sadd.s32 4294967295, %s1339_s7   ;;  %s1339_s7 = sphi %s1405_s7, %s22_s7   ;;  %s1335_s30 = sphi %s1403_s30, %s1686_s30   ;;  %s1331_s29 = sphi %s1401_s29, %s1685_s29   ;;  %s1327_s28 = sphi %s1399_s28, %s1684_s28   ;;  %s1323_s27 = sphi %s1397_s27, %s1683_s27   ;;  %s1319_s26 = sphi %s1395_s26, %s1682_s26   ;;  %s1315_s25 = sphi %s1393_s25, %s1681_s25   ;;  %s1311_s24 = sphi %s1391_s24, %s1680_s24   ;;  %s1307_s23 = sphi %s1389_s23, %s1679_s23   ;;  %s1303_s22 = sphi %s1387_s22, %s1688_s22   ;;  %s1299_s21 = sphi %s1385_s21, %s1687_s21  }
   0xc   : > { %1662 = sst [smem:[#allocation10_spill]] %s1315_s25  ;;  %s963_s9 = sadd.s32 4294967294, %s1339_s7  }
   0xd   : > { %1663 = sst [smem:[#allocation11_spill]] %s1319_s26  ;;  %s37_s10 = sadd.s32 1, %s1331_s29 }
   0xe   : > { %1664 = sst [smem:[#allocation12_spill]] %s1331_s29  ;;  %s41_s11 = sadd.s32 1, %s1335_s30 }
   0xf   : > { %1665 = sst [smem:[#allocation13_spill]] %s1335_s30  ;;  %p39_p0 = scmp.ge.s32.totalorder %s37_s10, 2 }
  0x10   : > { %s154_s12 = sadd.s32 1, %s1319_s26  ;;  %p161_p1 = scmp.ne.s32.totalorder %s1319_s26, %s1315_s25 }
  0x11   : > { %p162_p2 = scmp.eq.s32.totalorder %s1339_s7, 0  ;;  %s1690_s10 = smov (%p39_p0, %s37_s10), 0 }
  0x12   : > { %1666 = sst [smem:[#allocation14_spill]] %s1690_s10  ;;  %s1692_s11 = smov (!%p39_p0, %s41_s11), %s1335_s30 }
  0x13   : > { %s151_s13 = ssub.s32 %s1331_s29, %s1690_s10  ;;  %p1451_p3 = por %p162_p2, %p161_p1 }
  0x14   : > { %p43_p4 = scmp.ge.s32.totalorder %s1692_s11, 2  ;;  %p152_p5 = scmp.eq.s32.totalorder %s151_s13, 0 }
  0x15   : > { %p167_p6 = scmp.ne.s32.totalorder %s1315_s25, %s1311_s24  ;;  %p168_p7 = scmp.eq.s32.totalorder %s962_s8, 0 }
  0x16   : > { %s1694_s11 = smov (%p43_p4, %s1692_s11), 0  ;;  %s210_s19 = sadd.s32 1, %s1307_s23 }
  0x17   : > { %1668 = sst [smem:[#allocation15_spill]] %s1694_s11  ;;  %p1461_p8 = por %p168_p7, %p167_p6 }
  0x18   : > { %s1459_s15 = scalar_select %p152_p5, %s1319_s26, %s154_s12  }
  0x19   : > { %s203_s17 = ssub.s32 %s1335_s30, %s1694_s11  ;;  %p220_p10 = scmp.ne.s32.totalorder %s1307_s23, %s1303_s22 }
  0x1a   : > { %1669 = sst [smem:[#allocation16_spill]] %s1459_s15  ;;  %s205_s18 = sor.u32 %s203_s17, %s151_s13 }
  0x1b   : > { %p208_p9 = scmp.eq.s32.totalorder %s205_s18, 0  ;;  %p221_p11 = scmp.eq.s32.totalorder %s962_s8, 3 }
  0x1c   : > { %p226_p12 = scmp.ne.s32.totalorder %s1303_s22, %s1299_s21  ;;  %p227_p0 = scmp.eq.s32.totalorder %s963_s9, 3 }
  0x1d   : > { %s1473_s20 = scalar_select %p208_p9, %s1307_s23, %s210_s19  }
  0x1e   : > { %p1475_p13 = por %p221_p11, %p220_p10  ;;  %p1070_p1 = scmp.lt.s32.totalorder %s1339_s7, 4 }
  0x1f   : > { %1671 = sst [smem:[#allocation17_spill]] %s1473_s20  ;;  %p1480_p2 = por %p227_p0, %p226_p12 }
  0x20   : > { %s282_s13 = sand.u32 1, %s1319_s26   ;;  %s1002_s18 = sshll.u32 %s1331_s29, 7 }
  0x21   : > { %s1673_s12 = scalar_select %p1480_p2, 1, 0 }
  0x22   : > { %s966_s17 = sshll.u32 %s282_s13, 3  ;;  %s1675_s4 = sld [smem:[#allocation19_spill]] }
  0x23   : > { %1674 = sst [smem:[#allocation18_spill]] %s1673_s12  ;;  %s286_s30 = scalar_lea.vmem [#allocation3], %s966_s17 }
  0x24   : > { %s293_s19 = sshll.u32 %s286_s30, 4  ;;  %p1491_p4 = pnand %p1070_p1, %p1451_p3  ;;  %s294_s19 = int_to_ptr.vmem [resolvable:$true] %s293_s19 }
  0x25   : > { %p969_p5 = scmp.ge.s32.totalorder %s1339_s7, 1  ;;  %s283_s9 = scalar_lea.sflag [#allocation4], %s282_s13 }
  0x26   : > { %p1193_p6 = pneg %p1491_p4  ;;  %s1204_s26 = scalar_lea.vmem %s294_s19, 128 }
  0x27   : > { %p1205_p7 = scmp.ne.s32.totalorder %s294_s19, %s1204_s26  ;;  %s1341_s29 = smov [#allocation3]  }
  0x28   : > { %s292_s8 = scalar_lea.hbm %s1675_s4, %s1002_s18  ;;  %s1209_s10 = sshll.u32 %s1341_s29, 4  ;;  %s1210_s10 = int_to_ptr.vmem [resolvable:$false] %s1209_s10 }
  0x29   : > { %p1207_p9 = pnand %p1205_p7, %p1193_p6  ;;  %s1211_s11 = scalar_lea.vmem %s1210_s10, 256 }
  0x2a   : > { %p1212_p11 = scmp.lt.s32.totalorder %s294_s19, %s1210_s10  ;;  %p1213_p12 = scmp.lt.s32.totalorder %s1211_s11, %s1204_s26 }
  0x2b   : > { %p1208_p10 = pneg %p1207_p9 }
  0x2c   : > { %p1214_p0 = por %p1213_p12, %p1212_p11 }
  0x2e   : > { %p1215_p3 = pnand %p1214_p0, %p1208_p10 }
  0x30   : > { %1218 = shalt.err (!%p1215_p3)
}
  0x31   : > { %s1342_s30 = smov 64   ;;  %s1343_s14 = smov 4  }
  0x32   : > { %1065 = dma.hbm_to_vmem [thread:$0]  (!%p1491_p4), %s292_s8, 128, %s294_s19, %s283_s9, %s1342_s30, %s1342_s30, %s1343_s14  }
  0x33   : > { %p309_p1 = scmp.lt.s32.totalorder %s1339_s7, 5 }
  0x35   : > { %p310_p6 = pnand %p969_p5, %p309_p1 }
  0x36   : > { %s315_s29 = sand.u32 (!%p310_p6), 1, %s1315_s25  }
  0x37   : > { %313 = sbr.rel (%p310_p6) target bundleno = 762 (0x2fa), region = 44  ;;  %s1504_s13 = sshll.u32 (!%p310_p6), %s315_s29, 3 }
  0x38   : > { %s316_s26 = scalar_lea.sflag (!%p310_p6), [#allocation4], %s315_s29  ;;  %s319_s17 = scalar_lea.vmem (!%p310_p6), [#allocation3], %s1504_s13 }
  0x3c   : > { %1290 = dma.done.wait (%p1461_p8), %s316_s26, 128  }
  0x3d   : > { %1292 = vsyncadd (%p1461_p8), %s316_s26, 4294967168  ;;  %p376_p4 = scmp.lt.s32.totalorder %s1327_s28, 1  ;;  %p389_p5 = scmp.lt.s32.totalorder %s1323_s27, 1  ;;  %v1344_v0 = vmov 0.0   ;;  %vm1345_vm0 = vmmov 0   ;;  %v1346_v1 = vmov 0  }
  0x3e   : > { %1024 = vmatprep.subr.bf16.mxu0 %v1344_v0  ;;  %1030 = vmatprep.subr.bf16.mxu1 %v1344_v0  ;;  %vm438_vm1 = vcmask 130048   ;;  %v1170_v6 = vld [vmem:[%s319_s17] sm:$0xff]   ;;  %vm491_vm2 = vcmask 519168   ;;  %vm659_vm3 = vcmask 523264   ;;  %s998_s17 = sshll.u32 %s1327_s28, 2  ;;  %s1347_s30 = smov [#allocation6]  }
  0x3f   : > { %s377_s15 = scalar_select %p376_p4, %s1327_s28, 1  ;;  %1026 = vmatprep.mubr.msk.bf16.mxu0 %vm1345_vm0, %v1344_v0  ;;  %1032 = vmatprep.mubr.msk.bf16.mxu1 %vm1345_vm0, %v1344_v0 }
  0x40   : > { %s390_s16 = scalar_select %p389_p5, %s1323_s27, 1  ;;  %1167 = vset.pattern.permute.xlu0 %v1346_v1 }
  0x41   : > { %s1004_s18 = sshll.u32 %s377_s15, 3  ;;  %s1003_s8 = sshll.u32 %s377_s15, 4 }
  0x42   : > { %s388_s10 = scalar_lea.vmem %s1646_s1, %s1004_s18  ;;  %s383_s14 = scalar_lea.vmem %s1645_s0, %s1003_s8 }
  0x43   : > { %s1005_s29 = sshll.u32 %s390_s16, 3  ;;  %s1006_s13 = sshll.u32 %s390_s16, 4  ;;  %v1169_v2 = vld [vmem:[%s388_s10] sm:$0xff]   ;;  %v1535_v4 = vld [vmem:[%s383_s14 + $0x8] sm:$0xff] }
  0x44   : > { %s393_s25 = scalar_lea.vmem %s1647_s2, %s1005_s29  ;;  %s398_s12 = scalar_lea.vmem %s1648_s3, %s1006_s13  ;;  %v1533_v3 = vld [vmem:[%s383_s14] sm:$0xff]  ;;  %1025 = vmatpush3.bf16.msra.mxu0 %v1169_v2  ;;  %566 = vxpose.xlu1.c.b16.start.end [1/1] (short) (narrow) %v1169_v2, 64 }
  0x45   : > { %v494_v5 = vpack.c.bf16 %v1535_v4, %v1533_v3  ;;  %v1171_v7 = vld [vmem:[%s393_s25] sm:$0xff]   ;;  %v498_v9 = vld [vmem:[%s398_s12 + $0x8] sm:$0xff]  ;;  %s403_s20 = scalar_lea.vmem %s1650_s5, %s1006_s13  ;;  %s373_s25 = sand.u32 1, %s1303_s22  }
  0x46   : > { %v497_v8 = vld [vmem:[%s398_s12] sm:$0xff]  ;;  %v416_v10 = vld [vmem:[%s403_s20 + $0x8] sm:$0xff]  ;;  %s997_s12 = sshll.u32 %s1323_s27, 1  ;;  %s971_s15 = sshll.u32 %s373_s25, 4 }
  0x47   : > { %1031 = vmatpush3.bf16.msra.mxu1 %v494_v5  ;;  %501 = vperm.xlu0 %1167, %v497_v8   ;;  %v415_v11 = vld [vmem:[%s403_s20] sm:$0xff]  ;;  %s802_s16 = sadd.s32 %s998_s17, %s997_s12  ;;  %s375_s8 = scalar_lea.vmem [#allocation6], %s971_s15 }
  0x48   : > { %1027 = vmatmul.mubr.msk.bf16.vlgmr.msra.gmra.mxu0 %vm438_vm1, %v1170_v6  ;;  %1046 = vmatprep.subr.bf16.mxu1 %v1344_v0  ;;  %s999_s18 = sshll.u32 %s802_s16, 7  ;;  %s805_s19 = sshll.u32 %s375_s8, 4  ;;  %s1581_s19 = int_to_ptr.vmem [resolvable:$true] %s805_s19 }
  0x49   : > { %1168 = vset.pattern.permute.xlu1 %v1346_v1  ;;  %s1579_s28 = scalar_lea.hbm %s1651_s6, %s999_s18  ;;  %s1585_s10 = scalar_lea.sflag [#allocation5], %s373_s25 }
  0x4a   : > { %1033 = vmatmul.mubr.msk.bf16.vlgmr.msra.gmra.mxu1 %vm438_vm1, %v1171_v7  ;;  %s1219_s11 = scalar_lea.vmem %s1581_s19, 256  ;;  %s1223_s14 = sshll.u32 %s1347_s30, 4  ;;  %s1224_s14 = int_to_ptr.vmem [resolvable:$false] %s1223_s14 }
  0x4b   : > { %506 = vperm.xlu0 %1167, %v498_v9   ;;  %1054 = vmatprep.mubr.msk.bf16.mxu1 %vm1345_vm0, %v1344_v0  ;;  %p1220_p8 = scmp.ne.s32.totalorder %s1581_s19, %s1219_s11  ;;  %s1225_s29 = scalar_lea.vmem %s1224_s14, 512 }
  0x4c   : > { %p1226_p10 = scmp.lt.s32.totalorder %s1581_s19, %s1224_s14  ;;  %p1227_p11 = scmp.lt.s32.totalorder %s1225_s29, %s1219_s11 }
  0x4d   : > { %p1221_p7 = pnand %p1220_p8, %p1475_p13 }
  0x4e   : > { %p1228_p12 = por %p1227_p11, %p1226_p10 }
  0x4f   : > { %424 = vperm.xlu0 %1167, %v416_v10   ;;  %p1222_p9 = pneg %p1221_p7 }
  0x51   : > { %p1229_p0 = pnand %p1228_p12, %p1222_p9 }
  0x54   : > { %419 = vperm.xlu1 %1168, %v415_v11  }
  0xa6   : > { %v574_v12 = vpop.trf.xlu1 }
  0xa7   : > { %1038 = vmatprep.mubr.msk.bf16.mxu0 %vm438_vm1, %v574_v12 }
  0xaa   : > { %v575_v13 = vpop.trf.xlu1 }
  0xae   : > { %v576_v14 = vpop.trf.xlu1 }
  0xb2   : > { %v577_v16 = vpop.trf.xlu1 }
  0xc2   : > { %v502_v15 = vpop.permute.xlu0 %501 }
  0xc6   : > { %v507_v17 = vpop.permute.xlu0 %506 }
  0xca   : > { %v425_v23 = vpop.permute.xlu0 %424 }
  0xcf   : > { %v420_v18 = vpop.permute.xlu1 %419 }
 0x108   : > { %v476_v19 = vpop.f32.mrf.mxu0 }
 0x109   : > { %v477_v20 = vadd.f32 %v476_v19, %v420_v18 }
 0x10a   : > { %v552_v21 = vpop.f32.mrf.mxu1  ;;  %v1028_v22 = vpop.f32.mrf.mxu0 }
 0x10b   : > { %v1008_v24 = vpack.c.bf16 %v477_v20, %v477_v20  ;;  %v553_v30 = vadd.f32 %v552_v21, %v502_v15 }
 0x10c   : > { %v1034_v25 = vpop.f32.mrf.mxu1  ;;  %v479_v26 = vpop.f32.mrf.mxu0 }
 0x10d   : > { %492 = vst.msk [vmem:[#allocation2] sm:$0xf] %vm491_vm2, %v1008_v24  ;;  %v480_v27 = vadd.f32 %v479_v26, %v425_v23 }
 0x10e   : > { %v555_v28 = vpop.f32.mrf.mxu1  ;;  %v1029_v29 = vpop.f32.mrf.mxu0 }
 0x10f   : > { %v1009_v31 = vpack.c.bf16 %v480_v27, %v480_v27  ;;  %v556_v32 = vadd.f32 %v555_v28, %v507_v17 }
 0x110   : > { %v1035_v33 = vpop.f32.mrf.mxu1 }
 0x111   : > { %493 = vst.msk [vmem:[#allocation2 + $0x4] sm:$0xf] %vm491_vm2, %v1009_v31  ;;  %v559_v34 = vpack.c.bf16 %v556_v32, %v553_v30 }
 0x113   : > { %1036 = vmatprep.subr.bf16.mxu0 %v559_v34 }
 0x114   : > { %1037 = vmatpush3.bf16.msra.mxu0 %v559_v34 }
 0x117   : > { %1039 = vmatmul.mubr.msk.bf16.vlgmr.msra.gmra.mxu0 %vm438_vm1, %v575_v13 }
 0x118   : > { %1042 = vmatprep.mubr.msk.bf16.mxu0 %vm438_vm1, %v576_v14 }
 0x11f   : > { %1043 = vmatmul.mubr.msk.bf16.gmra.mxu0 %vm438_vm1, %v577_v16 }
 0x1d7   : > { %v1040_v35 = vpop.f32.mrf.mxu0 }
 0x1d8   : > { %v662_v48 = vsel %vm659_vm3, %v1040_v35, -inf }
 0x1d9   : > { %v628_v36 = vpop.f32.mrf.mxu0 }
 0x1da   : > { %v660_v49 = vsel %vm659_vm3, %v628_v36, -inf }
 0x1db   : > { %v1041_v37 = vpop.f32.mrf.mxu0 }
 0x1dc   : > { %v663_v42 = vsel %vm659_vm3, %v1041_v37, -inf }
 0x1dd   : > { %v631_v38 = vpop.f32.mrf.mxu0 }
 0x1de   : > { %v661_v50 = vsel %vm659_vm3, %v631_v38, -inf }
 0x1df   : > { %v1044_v39 = vpop.f32.mrf.mxu0 }
 0x1e0   : > { %v668_v43 = vsel %vm659_vm3, %v1044_v39, -inf }
 0x1e1   : > { %v644_v40 = vpop.f32.mrf.mxu0  ;;  %v669_v52 = vmax.f32 %v662_v48, %v668_v43 }
 0x1e2   : > { %v664_v44 = vsel %vm659_vm3, %v644_v40, -inf }
 0x1e3   : > { %v1045_v41 = vpop.f32.mrf.mxu0  ;;  %v665_v53 = vmax.f32 %v660_v49, %v664_v44 }
 0x1e4   : > { %v670_v45 = vsel %vm659_vm3, %v1045_v41, -inf }
 0x1e5   : > { %v671_v46 = vmax.f32 %v663_v42, %v670_v45  ;;  %v647_v47 = vpop.f32.mrf.mxu0 }
 0x1e6   : > { %v666_v51 = vsel %vm659_vm3, %v647_v47, -inf }
 0x1e7   : > { %v667_v54 = vmax.f32 %v661_v50, %v666_v51  ;;  %v673_v55 = vmax.f32 %v669_v52, %v671_v46  ;;  %v1172_v46 = vld [vmem:[#allocation2] sm:$0xff]  }
 0x1e9   : > { %v672_v56 = vmax.f32 %v665_v53, %v667_v54 }
 0x1eb   : > { %v674_v57 = vmax.f32 %v672_v56, %v673_v55 }
 0x1ed   : > { %v675_v58 = vrot.slane %v674_v57, 4 }
 0x1ef   : > { %v676_v59 = vmax.f32 %v674_v57, %v675_v58 }
 0x1f1   : > { %v677_v60 = vrot.slane %v676_v59, 2 }
 0x1f3   : > { %v678_v61 = vmax.f32 %v676_v59, %v677_v60 }
 0x1f5   : > { %v679_v62 = vrot.slane %v678_v61, 1 }
 0x1f7   : > { %v680_v63 = vmax.f32 %v678_v61, %v679_v62 }
 0x1f9   : > { %v681_v1 = vsub.f32 %v628_v36, %v680_v63  ;;  %v682_v2 = vsub.f32 %v631_v38, %v680_v63  ;;  %v683_v5 = vsub.f32 %v1040_v35, %v680_v63  ;;  %v684_v6 = vsub.f32 %v1041_v37, %v680_v63 }
 0x1fa   : > { %v685_v7 = vsub.f32 %v644_v40, %v680_v63  ;;  %v686_v8 = vsub.f32 %v647_v47, %v680_v63  ;;  %v687_v9 = vsub.f32 %v1044_v39, %v680_v63  ;;  %v688_v13 = vsub.f32 %v1045_v41, %v680_v63 }
 0x1fb   : > { %v689_v10 = vmul.f32 1.442695, %v681_v1  ;;  %v691_v11 = vmul.f32 1.442695, %v682_v2  ;;  %v693_v12 = vmul.f32 1.442695, %v683_v5 }
 0x1fc   : > { %v695_v14 = vmul.f32 1.442695, %v684_v6  ;;  %v697_v15 = vmul.f32 1.442695, %v685_v7  ;;  %v699_v16 = vmul.f32 1.442695, %v686_v8 }
 0x1fd   : > { %1173 = vpow2.f32 %v689_v10  ;;  %v701_v17 = vmul.f32 1.442695, %v687_v9  ;;  %v703_v18 = vmul.f32 1.442695, %v688_v13 }
 0x1fe   : > { %1175 = vpow2.f32 %v691_v11 }
 0x1ff   : > { %1177 = vpow2.f32 %v693_v12 }
 0x200   : > { %1179 = vpow2.f32 %v695_v14 }
 0x201   : > { %1181 = vpow2.f32 %v697_v15 }
 0x202   : > { %1183 = vpow2.f32 %v699_v16 }
 0x203   : > { %1185 = vpow2.f32 %v701_v17 }
 0x204   : > { %1187 = vpow2.f32 %v703_v18 }
 0x20a   : > { %v1174_v19 = vpop.eup %1173 }
 0x20b   : > { %v1176_v20 = vpop.eup %1175  ;;  %v705_v21 = vsel %vm659_vm3, %v1174_v19, 0.0 }
 0x20c   : > { %v1178_v22 = vpop.eup %1177  ;;  %v706_v23 = vsel %vm659_vm3, %v1176_v20, 0.0  ;;  %v728_v45 = vpack.c.bf16 %v1176_v20, %v1174_v19 }
 0x20d   : > { %v1180_v24 = vpop.eup %1179  ;;  %v707_v25 = vadd.f32 %v706_v23, %v705_v21  ;;  %v708_v27 = vsel %vm659_vm3, %v1178_v22, 0.0 }
 0x20e   : > { %v1182_v26 = vpop.eup %1181  ;;  %v710_v31 = vsel %vm659_vm3, %v1180_v24, 0.0  ;;  %v729_v44 = vpack.c.bf16 %v1180_v24, %v1178_v22 }
 0x20f   : > { %v1184_v28 = vpop.eup %1183  ;;  %v709_v29 = vadd.f32 %v708_v27, %v707_v25  ;;  %v712_v34 = vsel %vm659_vm3, %v1182_v26, 0.0 }
 0x210   : > { %v1186_v30 = vpop.eup %1185  ;;  %v714_v37 = vsel %vm659_vm3, %v1184_v28, 0.0  ;;  %v730_v40 = vpack.c.bf16 %v1184_v28, %v1182_v26 }
 0x211   : > { %v1188_v32 = vpop.eup %1187  ;;  %v711_v33 = vadd.f32 %v710_v31, %v709_v29  ;;  %v716_v39 = vsel %vm659_vm3, %v1186_v30, 0.0 }
 0x212   : > { %v731_v35 = vpack.c.bf16 %v1188_v32, %v1186_v30  ;;  %v718_v42 = vsel %vm659_vm3, %v1188_v32, 0.0 }
 0x213   : > { %v713_v36 = vadd.f32 %v712_v34, %v711_v33 }
 0x214   : > { %1047 = vmatpush3.bf16.msra.mxu1 %v731_v35 }
 0x215   : > { %v715_v38 = vadd.f32 %v714_v37, %v713_v36  ;;  %1048 = vmatprep.subr.bf16.mxu1 %v1344_v0 }
 0x217   : > { %v717_v41 = vadd.f32 %v716_v39, %v715_v38 }
 0x218   : > { %1049 = vmatpush3.bf16.msra.mxu1 %v730_v40 }
 0x219   : > { %v719_v43 = vadd.f32 %v718_v42, %v717_v41  ;;  %1050 = vmatprep.subr.bf16.mxu1 %v1344_v0 }
 0x21b   : > { %v720_v47 = vrot.slane %v719_v43, 4 }
 0x21c   : > { %1051 = vmatpush3.bf16.msra.mxu1 %v729_v44 }
 0x21d   : > { %1052 = vmatprep.subr.bf16.mxu1 %v1344_v0  ;;  %v721_v48 = vadd.f32 %v720_v47, %v719_v43 }
 0x21f   : > { %v722_v49 = vrot.slane %v721_v48, 2 }
 0x220   : > { %1053 = vmatpush3.bf16.msra.mxu1 %v728_v45 }
 0x221   : > { %v723_v50 = vadd.f32 %v722_v49, %v721_v48 }
 0x223   : > { %1055 = vmatmul.mubr.msk.bf16.vlgmr.msra.gmra.mxu1 %vm659_vm3, %v1172_v46  ;;  %v724_v51 = vrot.slane %v723_v50, 1 }
 0x225   : > { %v725_v52 = vadd.f32 %v724_v51, %v723_v50 }
 0x227   : > { %1189 = vrcp.f32 %v725_v52 }
 0x234   : > { %v1190_v53 = vpop.eup %1189 }
 0x2e3   : > { %v774_v54 = vpop.f32.mrf.mxu1 }
 0x2e4   : > { %v782_v0 = vmul.f32 %v1190_v53, %v774_v54 }
 0x2e5   : > { %v1056_v55 = vpop.f32.mrf.mxu1 }
 0x2e6   : > { %v784_v56 = vadd.f32 %v782_v0, %v1533_v3 }
 0x2e7   : > { %v777_v57 = vpop.f32.mrf.mxu1 }
 0x2e8   : > { %786 = vst.msk [vmem:[%s375_s8] sm:$0xff] %vm659_vm3, %v784_v56  ;;  %v783_v58 = vmul.f32 %v1190_v53, %v777_v57 }
 0x2e9   : > { %v1057_v59 = vpop.f32.mrf.mxu1 }
 0x2ea   : > { %v785_v3 = vadd.f32 %v783_v58, %v1535_v4 }
 0x2ec   : > { %787 = vst.msk [vmem:[%s375_s8 + $0x8] sm:$0xff] %vm659_vm3, %v785_v3 }
 0x2ed   : > { %1232 = shalt.err (!%p1229_p0)
}
 0x2ee   : > { %s1233_s13 = scalar_lea.hbm %s1579_s28, 256  ;;  %s1237_s23 = scalar_lea.hbm %s1651_s6, 1024 }
 0x2ef   : > { %p1234_p3 = scmp.ne.s32.totalorder %s1579_s28, %s1233_s13  ;;  %p1238_p4 = scmp.lt.s32.totalorder %s1579_s28, %s1651_s6 }
 0x2f0   : > { %p1239_p5 = scmp.lt.s32.totalorder %s1237_s23, %s1233_s13 }
 0x2f1   : > { %p1235_p1 = pnand %p1234_p3, %p1475_p13 }
 0x2f2   : > { %p1240_p8 = por %p1239_p5, %p1238_p4 }
 0x2f3   : > { %p1236_p6 = pneg %p1235_p1 }
 0x2f5   : > { %p1241_p7 = pnand %p1240_p8, %p1236_p6 }
 0x2f7   : > { %1244 = shalt.err (!%p1241_p7)
}
 0x2f8   : > { %s1348_s12 = smov 128   ;;  %s1349_s17 = smov 8  }
 0x2f9   : > { %1060 = dma.vmem_to_hbm [thread:$0]  (%p1475_p13), %s1581_s19, 256, %s1579_s28, %s1585_s10, %s1348_s12, %s1348_s12, %s1349_s17  }
 0x2fa PF: > { %p1071_p9 = scmp.ge.s32.totalorder %s1339_s7, 2  ;;  %s820_s16 = sand.u32 1, %s1299_s21  }
 0x2fb   : > { %s821_s18 = scalar_lea.sflag [#allocation5], %s820_s16 }
 0x2fc   : > { %p1067_p10 = pnand %p1071_p9, %p1480_p2 }
 0x2fe   : > { %p1068_p11 = pneg %p1067_p10 }
 0x300   : > { %1294 = dma.done.wait (%p1068_p11), %s821_s18, 256  }
 0x301   : > { %1296 = vsyncadd (%p1068_p11), %s821_s18, 4294967040  ;;  %s22_s7 = sadd.s32 1, %s1339_s7   ;;  %s1678_s8 = sld [smem:[#allocation9_spill]] }
 0x302   : > { %p19_p12 = scmp.ge.s32.totalorder %s22_s7, 6   ;;  %s1679_s23 = sld [smem:[#allocation17_spill]] }
 0x303   : > { %s1680_s24 = sld [smem:[#allocation10_spill]]  ;;  %s1687_s21 = smov %s1303_s22 }
 0x304   : > { %s1681_s25 = sld [smem:[#allocation11_spill]] }
 0x305   : > { %s1682_s26 = sld [smem:[#allocation16_spill]]  ;;  %21 = sbr.rel (!%p19_p12) target bundleno = 11 (0xb), region = 108 }
 0x306   : > { %s1683_s27 = sld [smem:[#allocation12_spill]] }
 0x307   : > { %s1684_s28 = sld [smem:[#allocation13_spill]]  ;;  %s1688_s22 = smov %s1678_s8 }
 0x308   : > { %s1685_s29 = sld [smem:[#allocation14_spill]] }
 0x309   : > { %s1686_s30 = sld [smem:[#allocation15_spill]] }
 0x30a   :  { %826 = vsyncpa [#allocation4], 1 }
 0x30b   :  { %828 = vsyncpa [#allocation4 + $0x1], 1 }
 0x30c   :  { %829 = vsyncpa [#allocation5], 1 }
 0x30d   :  { %831 = vsyncpa [#allocation5 + $0x1], 1 }

</bundles_post_ra>
